<compile_context>
chip_gen: v6e
topology: v6e:2x2x1
jax: 0.10.0
libtpu: 0.0.40
codegen_flags: <defaults>
</compile_context>

<pallas_src>
import jax
import jax.numpy as jnp
from jax.experimental import pallas as pl
from jax.experimental.pallas import tpu as pltpu


def residual_fc_block_kernel(xq_ref, xkv_ref, wq_ref, wkv_ref,
                             w2_ref, b2_ref, alpha_ref, o_ref):
    D = wq_ref.shape[1]           # key / value / model dim (== 128 here)

    xq = xq_ref[...]              # (S, D)
    xkv = xkv_ref[...]            # (S, D)

    # ---------------- SelfAttention (fc1) ----------------
    q = jnp.dot(xq, wq_ref[...], preferred_element_type=jnp.float32)     # (S, D)
    # Fused K|V projection: one 256-wide MXU matmul instead of two 128-wide.
    kv = jnp.dot(xkv, wkv_ref[...], preferred_element_type=jnp.float32)  # (S, 2D)
    k = kv[:, :D]                                                         # (S, D)
    v = kv[:, D:]                                                         # (S, D)

    scale = 1.0 / (D ** 0.5)
    # scores = q @ k.T : contract feature dims directly, no explicit transpose.
    s = jax.lax.dot_general(q, k, (((1,), (1,)), ((), ())),
                            preferred_element_type=jnp.float32) * scale   # (S, S)

    m = jnp.max(s, axis=-1, keepdims=True)
    p = jnp.exp(s - m)
    l = jnp.sum(p, axis=-1, keepdims=True)
    p = p * pl.reciprocal(l, approx=False)   # EUP reciprocal; exact for 1e-4 tol

    attn = jnp.dot(p, v, preferred_element_type=jnp.float32)              # (S, D)

    # ---------------- Dropout(0.5) ----------------
    # Eval-mode dropout == identity.
    # TODO(synk): training-mode dropout would use pltpu.prng_seed +
    # pltpu.prng_random_bits to build a 0/2 mask; omitted for a deterministic
    # forward comparable to the reference.

    # ---------------- PReLU ----------------
    alpha = alpha_ref[0]
    h = jnp.where(attn > 0, attn, alpha * attn)

    # ---------------- fc2: Linear(dim, dim) ----------------
    h = jnp.dot(h, w2_ref[...], preferred_element_type=jnp.float32) + b2_ref[...]

    # ---------------- residual add (identity = xkv) + PReLU ----------------
    out = h + xkv
    o_ref[...] = jnp.where(out > 0, out, alpha * out)


def residual_fc_block(xq, xkv, wq_t, wk_t, wv_t, w2_t, b2, alpha):
    S, D = xq.shape
    Sk, Dk = xkv.shape
    assert Sk == S and Dk == D, "residual add requires matching xq / xkv shapes"

    # Fuse Wk^T and Wv^T into one (D, 2D) operand for a single 256-wide matmul.
    wkv_t = jnp.concatenate([wk_t, wv_t], axis=1)

    vmem = pl.BlockSpec(memory_space=pltpu.MemorySpace.VMEM)
    smem = pl.BlockSpec(memory_space=pltpu.MemorySpace.SMEM)

    # Single invocation (no grid): every operand is a whole-array VMEM block,
    # so there is no double-buffering, no per-step overhead and no K/V recompute.
    return pl.pallas_call(
        residual_fc_block_kernel,
        out_shape=jax.ShapeDtypeStruct((S, D), jnp.float32),
        in_specs=[
            vmem,   # xq          (S, D)
            vmem,   # xkv         (S, D)
            vmem,   # Wq^T        (D, D)
            vmem,   # [Wk|Wv]^T   (D, 2D)
            vmem,   # fc2 W^T     (D, D)
            vmem,   # fc2 bias    (1, D)
            smem,   # PReLU alpha (1,)
        ],
        out_specs=vmem,
    )(xq, xkv, wq_t, wkv_t, w2_t, b2, alpha)


# ---------------------------------------------------------------------------
# Pure-JAX reference (mirrors the PyTorch ResidualFcBlock forward, eval mode)
# ---------------------------------------------------------------------------
def ref_forward(xq, xkv, wq_t, wk_t, wv_t, w2_t, b2, alpha):
    q = xq @ wq_t
    k = xkv @ wk_t
    v = xkv @ wv_t
    s = (q @ k.T) / jnp.sqrt(jnp.float32(wq_t.shape[1]))
    p = jax.nn.softmax(s, axis=-1)
    out = p @ v
    # dropout: eval-mode identity
    out = jnp.where(out > 0, out, alpha * out)           # PReLU
    out = out @ w2_t + b2                                 # fc2
    out = out + xkv                                       # residual (identity = xkv)
    return jnp.where(out > 0, out, alpha * out)           # PReLU


if __name__ == "__main__":
    # Small, lane-dense shapes: seq = 16 rows, dim = 128 (full 128-lane vregs).
    S, D = 16, 128

    key = jax.random.PRNGKey(0)
    ks = jax.random.split(key, 7)

    xq = jax.random.normal(ks[0], (S, D), jnp.float32)
    xkv = jax.random.normal(ks[1], (S, D), jnp.float32)

    wscale = 1.0 / jnp.sqrt(jnp.float32(D))
    wq_t = wscale * jax.random.normal(ks[2], (D, D), jnp.float32)   # linear_q weight^T
    wk_t = wscale * jax.random.normal(ks[3], (D, D), jnp.float32)   # linear_k weight^T
    wv_t = wscale * jax.random.normal(ks[4], (D, D), jnp.float32)   # linear_v weight^T
    w2_t = wscale * jax.random.normal(ks[5], (D, D), jnp.float32)   # fc2 weight^T
    b2 = 0.1 * jax.random.normal(ks[6], (1, D), jnp.float32)        # fc2 bias
    alpha = jnp.array([0.25], jnp.float32)                          # PReLU parameter

    out = residual_fc_block(xq, xkv, wq_t, wk_t, wv_t, w2_t, b2, alpha)
    out = jax.block_until_ready(out)

    ref = ref_forward(xq, xkv, wq_t, wk_t, wv_t, w2_t, b2, 0.25)
    ref = jax.block_until_ready(ref)

    assert out.shape == (S, D)
    assert jnp.allclose(out, ref, atol=1e-4, rtol=1e-4), \
        f"max abs err {jnp.max(jnp.abs(out - ref))}"

    print("KERNEL_OK")
</pallas_src>

<mosaic_0001>
module attributes {stable_mosaic.version = 11 : i64} {
  func.func @residual_fc_block_kernel(%arg0: memref<16x128xf32, #tpu.memory_space<vmem>>, %arg1: memref<16x128xf32, #tpu.memory_space<vmem>>, %arg2: memref<128x128xf32, #tpu.memory_space<vmem>>, %arg3: memref<128x256xf32, #tpu.memory_space<vmem>>, %arg4: memref<128x128xf32, #tpu.memory_space<vmem>>, %arg5: memref<1x128xf32, #tpu.memory_space<vmem>>, %arg6: memref<1xf32, #tpu.memory_space<smem>>, %arg7: memref<16x128xf32, #tpu.memory_space<vmem>>) attributes {dimension_semantics = [], scalar_prefetch = 0 : i64, scratch_operands = 0 : i64, tpu.core_type = #tpu.core_type<tc>} {
    %c0 = arith.constant 0 : index
    %c0_0 = arith.constant 0 : index
    %0 = vector.load %arg0[%c0, %c0_0] : memref<16x128xf32, #tpu.memory_space<vmem>>, vector<16x128xf32>
    %c0_1 = arith.constant 0 : index
    %c0_2 = arith.constant 0 : index
    %1 = vector.load %arg1[%c0_1, %c0_2] : memref<16x128xf32, #tpu.memory_space<vmem>>, vector<16x128xf32>
    %c0_3 = arith.constant 0 : index
    %c0_4 = arith.constant 0 : index
    %2 = vector.load %arg2[%c0_3, %c0_4] : memref<128x128xf32, #tpu.memory_space<vmem>>, vector<128x128xf32>
    %cst = arith.constant dense<0.000000e+00> : vector<16x128xf32>
    %3 = tpu.matmul %0, %2, %cst {dimension_numbers = #tpu.dot_dimension_numbers<[1], [0], [0], [1], [0, 0, 1, 1], [], []>} : vector<16x128xf32>, vector<128x128xf32>, vector<16x128xf32> -> vector<16x128xf32>
    %c0_5 = arith.constant 0 : index
    %c0_6 = arith.constant 0 : index
    %4 = vector.load %arg3[%c0_5, %c0_6] : memref<128x256xf32, #tpu.memory_space<vmem>>, vector<128x256xf32>
    %cst_7 = arith.constant dense<0.000000e+00> : vector<16x256xf32>
    %5 = tpu.matmul %1, %4, %cst_7 {dimension_numbers = #tpu.dot_dimension_numbers<[1], [0], [0], [1], [0, 0, 1, 1], [], []>} : vector<16x128xf32>, vector<128x256xf32>, vector<16x256xf32> -> vector<16x256xf32>
    %6 = vector.extract_strided_slice %5 {offsets = [0, 0], sizes = [16, 128], strides = [1, 1]} : vector<16x256xf32> to vector<16x128xf32>
    %7 = vector.extract_strided_slice %5 {offsets = [0, 128], sizes = [16, 128], strides = [1, 1]} : vector<16x256xf32> to vector<16x128xf32>
    %cst_8 = arith.constant dense<0.000000e+00> : vector<16x16xf32>
    %8 = tpu.matmul %3, %6, %cst_8 {dimension_numbers = #tpu.dot_dimension_numbers<[1], [1], [0], [0], [0, 0, 1, 0], [], []>} : vector<16x128xf32>, vector<16x128xf32>, vector<16x16xf32> -> vector<16x16xf32>
    %cst_9 = arith.constant 0.0883883461 : f32
    %9 = vector.broadcast %cst_9 : f32 to vector<16x16xf32>
    %10 = arith.mulf %8, %9 : vector<16x16xf32>
    %cst_10 = arith.constant dense<0xFF800000> : vector<16xf32>
    %11 = vector.multi_reduction <maximumf>, %10, %cst_10 [1] : vector<16x16xf32> to vector<16xf32>
    %12 = vector.shape_cast %11 : vector<16xf32> to vector<16x1xf32>
    %13 = vector.broadcast %12 : vector<16x1xf32> to vector<16x16xf32>
    %14 = arith.subf %10, %13 : vector<16x16xf32>
    %15 = math.exp %14 : vector<16x16xf32>
    %cst_11 = arith.constant dense<0.000000e+00> : vector<16xf32>
    %16 = vector.multi_reduction <add>, %15, %cst_11 [1] : vector<16x16xf32> to vector<16xf32>
    %17 = vector.shape_cast %16 : vector<16xf32> to vector<16x1xf32>
    %18 = tpu.reciprocal %17 : vector<16x1xf32> -> vector<16x1xf32>
    %19 = vector.broadcast %18 : vector<16x1xf32> to vector<16x16xf32>
    %20 = arith.mulf %15, %19 : vector<16x16xf32>
    %cst_12 = arith.constant dense<0.000000e+00> : vector<16x128xf32>
    %21 = tpu.matmul %20, %7, %cst_12 {dimension_numbers = #tpu.dot_dimension_numbers<[1], [0], [0], [1], [0, 0, 1, 1], [], []>} : vector<16x16xf32>, vector<16x128xf32>, vector<16x128xf32> -> vector<16x128xf32>
    %c0_13 = arith.constant 0 : index
    %22 = memref.load %arg6[%c0_13] : memref<1xf32, #tpu.memory_space<smem>>
    %cst_14 = arith.constant 0.000000e+00 : f32
    %23 = vector.broadcast %cst_14 : f32 to vector<16x128xf32>
    %24 = arith.cmpf ogt, %21, %23 : vector<16x128xf32>
    %25 = vector.broadcast %22 : f32 to vector<16x128xf32>
    %26 = arith.mulf %25, %21 : vector<16x128xf32>
    %27 = arith.select %24, %21, %26 : vector<16x128xi1>, vector<16x128xf32>
    %c0_15 = arith.constant 0 : index
    %c0_16 = arith.constant 0 : index
    %28 = vector.load %arg4[%c0_15, %c0_16] : memref<128x128xf32, #tpu.memory_space<vmem>>, vector<128x128xf32>
    %cst_17 = arith.constant dense<0.000000e+00> : vector<16x128xf32>
    %29 = tpu.matmul %27, %28, %cst_17 {dimension_numbers = #tpu.dot_dimension_numbers<[1], [0], [0], [1], [0, 0, 1, 1], [], []>} : vector<16x128xf32>, vector<128x128xf32>, vector<16x128xf32> -> vector<16x128xf32>
    %c0_18 = arith.constant 0 : index
    %c0_19 = arith.constant 0 : index
    %30 = vector.load %arg5[%c0_18, %c0_19] : memref<1x128xf32, #tpu.memory_space<vmem>>, vector<1x128xf32>
    %31 = vector.broadcast %30 : vector<1x128xf32> to vector<16x128xf32>
    %32 = arith.addf %29, %31 : vector<16x128xf32>
    %33 = arith.addf %32, %1 : vector<16x128xf32>
    %cst_20 = arith.constant 0.000000e+00 : f32
    %34 = vector.broadcast %cst_20 : f32 to vector<16x128xf32>
    %35 = arith.cmpf ogt, %33, %34 : vector<16x128xf32>
    %36 = vector.broadcast %22 : f32 to vector<16x128xf32>
    %37 = arith.mulf %36, %33 : vector<16x128xf32>
    %38 = arith.select %35, %33, %37 : vector<16x128xi1>, vector<16x128xf32>
    %c0_21 = arith.constant 0 : index
    %c0_22 = arith.constant 0 : index
    %39 = vector.load %arg7[%c0_21, %c0_22] : memref<16x128xf32, #tpu.memory_space<vmem>>, vector<16x128xf32>
    tpu.vector_store %arg7[%c0_21, %c0_22], %38 {strides = array<i32>} : memref<16x128xf32, #tpu.memory_space<vmem>>, vector<16x128xf32>,
    return
  }
}

</mosaic_0001>

<bundles_post_ra>
// kernel: tpu_custom_call.1
= control target key start
LH: loop header
LB: loop body
LE: loop exit
PB: predicated region body
PF: predicated region fallthrough
CT: control target
= control target key end

     0   :  { %13 = vsyncpa [#allocation4], 0  ;;  %s1000_s0 = inlined_call_operand.hbm [shape: f32[16,128], index: 0, kind: input, shape index: {}]   ;;  %s1001_s1 = inlined_call_operand.hbm [shape: f32[16,128], index: 1, kind: input, shape index: {}]   ;;  %s1002_s2 = inlined_call_operand.hbm [shape: f32[128,128], index: 2, kind: input, shape index: {}]   ;;  %s1003_s3 = inlined_call_operand.hbm [shape: f32[128,256], index: 3, kind: input, shape index: {}]   ;;  %s1004_s4 = inlined_call_operand.hbm [shape: f32[128,128], index: 4, kind: input, shape index: {}]   ;;  %s1005_s5 = inlined_call_operand.vmem [shape: f32[1,128], index: 5, kind: input, shape index: {}]   ;;  %s1006_s6 = inlined_call_operand.<no memory space> [shape: f32[1], index: 6, kind: input, shape index: {}]   ;;  %s1007_s7 = inlined_call_operand.hbm [shape: f32[16,128], index: 7, kind: output, shape index: {}]  }
   0x1   :  { %14 = vsyncpa [#allocation7], 0 }
   0x2   :  { %15 = vsyncpa [#allocation10], 0 }
   0x3   :  { %16 = vsyncpa [#allocation5], 0  ;;  %s894_s24 = smov [#allocation6]   ;;  %s895_s26 = smov [#allocation9]  }
   0x4   :  { %s34_s25 = sshll.u32 %s894_s24, 4  ;;  %s58_s27 = sshll.u32 %s895_s26, 4  ;;  %s35_s25 = int_to_ptr.vmem [resolvable:$true] %s34_s25  ;;  %s59_s27 = int_to_ptr.vmem [resolvable:$true] %s58_s27 }
   0x5   :  { %s774_s28 = scalar_lea.vmem %s35_s25, 256  ;;  %p779_p1 = scmp.lt.s32.totalorder %s35_s25, %s35_s25 }
   0x6   :  { %p775_p0 = scmp.ne.s32.totalorder %s35_s25, %s774_s28  ;;  %p780_p2 = scmp.lt.s32.totalorder %s774_s28, %s774_s28 }
   0x8   :  { %p781_p3 = por %p780_p2, %p779_p1 }
   0xa   :  { %p782_p4 = pnand %p781_p3, %p775_p0 }
   0xc   :  { %785 = shalt.err (!%p782_p4)
}
   0xd   :  { %s896_s29 = smov 128   ;;  %s897_s30 = smov 8  }
   0xe   :  { %40 = dma.hbm_to_vmem [thread:$0]  %s1001_s1, 256, %s35_s25, [#allocation7], %s896_s29, %s896_s29, %s897_s30  }
   0xf   :  { %s794_s10 = scalar_lea.vmem %s59_s27, 4096  ;;  %p799_p6 = scmp.lt.s32.totalorder %s59_s27, %s59_s27 }
  0x10   :  { %p795_p5 = scmp.ne.s32.totalorder %s59_s27, %s794_s10  ;;  %p800_p7 = scmp.lt.s32.totalorder %s794_s10, %s794_s10 }
  0x12   :  { %p801_p8 = por %p800_p7, %p799_p6 }
  0x14   :  { %p802_p9 = pnand %p801_p8, %p795_p5 }
  0x16   :  { %805 = shalt.err (!%p802_p9)
}
  0x17   :  { %s898_s11 = smov 256   ;;  %s899_s12 = smov 16  }
  0x18   :  { %64 = dma.hbm_to_vmem [thread:$0]  %s1003_s3, 4096, %s59_s27, [#allocation10], %s898_s11, %s898_s11, %s899_s12  }
  0x19   :  { %s900_s15 = smov [#allocation3]   ;;  %s901_s17 = smov [#allocation8]  }
  0x1a   :  { %s22_s16 = sshll.u32 %s900_s15, 4  ;;  %s46_s18 = sshll.u32 %s901_s17, 4  ;;  %s23_s16 = int_to_ptr.vmem [resolvable:$true] %s22_s16  ;;  %s47_s18 = int_to_ptr.vmem [resolvable:$true] %s46_s18 }
  0x1b   :  { %s814_s1 = scalar_lea.vmem %s23_s16, 256  ;;  %p819_p11 = scmp.lt.s32.totalorder %s23_s16, %s23_s16 }
  0x1c   :  { %p815_p10 = scmp.ne.s32.totalorder %s23_s16, %s814_s1  ;;  %p820_p12 = scmp.lt.s32.totalorder %s814_s1, %s814_s1 }
  0x1e   :  { %p821_p13 = por %p820_p12, %p819_p11 }
  0x20   :  { %p822_p0 = pnand %p821_p13, %p815_p10 }
  0x22   :  { %825 = shalt.err (!%p822_p0)
}
  0x23   :  { %28 = dma.hbm_to_vmem [thread:$0]  %s1000_s0, 256, %s23_s16, [#allocation4], %s896_s29, %s896_s29, %s897_s30  }
  0x24   :  { %s834_s3 = scalar_lea.vmem %s47_s18, 2048  ;;  %p839_p2 = scmp.lt.s32.totalorder %s47_s18, %s47_s18 }
  0x25   :  { %p835_p1 = scmp.ne.s32.totalorder %s47_s18, %s834_s3  ;;  %p840_p3 = scmp.lt.s32.totalorder %s834_s3, %s834_s3 }
  0x27   :  { %p841_p4 = por %p840_p3, %p839_p2 }
  0x29   :  { %p842_p5 = pnand %p841_p4, %p835_p1 }
  0x2b   :  { %845 = shalt.err (!%p842_p5)
}
  0x2c   :  { %52 = dma.hbm_to_vmem [thread:$0]  %s1002_s2, 2048, %s47_s18, [#allocation7], %s896_s29, %s896_s29, %s897_s30  }
  0x2d   :  { %s902_s23 = smov [#allocation11]  }
  0x2e   :  { %s70_s24 = sshll.u32 %s902_s23, 4  ;;  %s71_s24 = int_to_ptr.vmem [resolvable:$true] %s70_s24 }
  0x2f   :  { %s854_s25 = scalar_lea.vmem %s71_s24, 2048  ;;  %p859_p7 = scmp.lt.s32.totalorder %s71_s24, %s71_s24 }
  0x30   :  { %p855_p6 = scmp.ne.s32.totalorder %s71_s24, %s854_s25  ;;  %p860_p8 = scmp.lt.s32.totalorder %s854_s25, %s854_s25 }
  0x32   :  { %p861_p9 = por %p860_p8, %p859_p7 }
  0x34   :  { %p862_p10 = pnand %p861_p9, %p855_p6 }
  0x36   :  { %865 = shalt.err (!%p862_p10)
}
  0x37   :  { %76 = dma.hbm_to_vmem [thread:$0]  %s1004_s4, 2048, %s71_s24, [#allocation10], %s896_s29, %s896_s29, %s897_s30  }
  0x38   :  { %886 = dma.done.wait [#allocation4], 256  }
  0x39   :  { %887 = vsyncadd [#allocation4], 4294967040 }
  0x3a   :  { %888 = dma.done.wait [#allocation7], 2304  }
  0x3b   :  { %889 = vsyncadd [#allocation7], 4294964992 }
  0x3c   :  { %890 = dma.done.wait [#allocation10], 6144  }
  0x3d   :  { %891 = vsyncadd [#allocation10], 4294961152  ;;  %v903_v0 = vmov 0.0   ;;  %v222_v1 = vld [vmem:[#allocation9 + $0xf8] sm:$0xff]  ;;  %v221_v2 = vld [vmem:[#allocation9 + $0xf0] sm:$0xff]  ;;  %vm377_vm0 = vcmask 130048  }
  0x3e   :  { %287 = vmatprep.mubr.f32.mxu1 %v903_v0  ;;  %v220_v3 = vld [vmem:[#allocation9 + $0xe8] sm:$0xff]  ;;  %223 = vmatprep.subr.mxu1 %v222_v1  ;;  %v219_v4 = vld [vmem:[#allocation9 + $0xe0] sm:$0xff]  ;;  %v218_v5 = vld [vmem:[#allocation9 + $0xd8] sm:$0xff] }
  0x3f   :  { %224 = vmatpush1.msra.mxu1 %v221_v2  ;;  %v115_v6 = vld [vmem:[#allocation8 + $0x78] sm:$0xff]  ;;  %v217_v7 = vld [vmem:[#allocation9 + $0xd0] sm:$0xff]  ;;  %v216_v9 = vld [vmem:[#allocation9 + $0xc8] sm:$0xff] }
  0x40   :  { %225 = vmatprep.subr.mxu1 %v220_v3  ;;  %663 = vmatprep.subr.mxu0 %v115_v6  ;;  %v114_v8 = vld [vmem:[#allocation8 + $0x70] sm:$0xff]  ;;  %v113_v10 = vld [vmem:[#allocation8 + $0x68] sm:$0xff]  ;;  %v215_v11 = vld [vmem:[#allocation9 + $0xc0] sm:$0xff] }
  0x41   :  { %226 = vmatpush1.msra.mxu1 %v219_v4  ;;  %664 = vmatpush3.msra.mxu0 %v115_v6  ;;  %v214_v12 = vld [vmem:[#allocation9 + $0xb8] sm:$0xff]  ;;  %v112_v13 = vld [vmem:[#allocation8 + $0x60] sm:$0xff]  ;;  %v213_v14 = vld [vmem:[#allocation9 + $0xb0] sm:$0xff] }
  0x42   :  { %227 = vmatprep.subr.mxu1 %v218_v5  ;;  %665 = vmatprep.subr.mxu0 %v114_v8  ;;  %v212_v15 = vld [vmem:[#allocation9 + $0xa8] sm:$0xff]  ;;  %v111_v16 = vld [vmem:[#allocation8 + $0x58] sm:$0xff]  ;;  %v211_v17 = vld [vmem:[#allocation9 + $0xa0] sm:$0xff] }
  0x43   :  { %228 = vmatpush1.msra.mxu1 %v217_v7  ;;  %666 = vmatpush3.msra.mxu0 %v114_v8  ;;  %v210_v18 = vld [vmem:[#allocation9 + $0x98] sm:$0xff]  ;;  %v110_v19 = vld [vmem:[#allocation8 + $0x50] sm:$0xff]  ;;  %v208_v21 = vld [vmem:[#allocation9 + $0x88] sm:$0xff] }
  0x44   :  { %229 = vmatprep.subr.mxu1 %v216_v9  ;;  %667 = vmatprep.subr.mxu0 %v113_v10  ;;  %v209_v20 = vld [vmem:[#allocation9 + $0x90] sm:$0xff]  ;;  %v109_v22 = vld [vmem:[#allocation8 + $0x48] sm:$0xff]  ;;  %v207_v23 = vld [vmem:[#allocation9 + $0x80] sm:$0xff] }
  0x45   :  { %230 = vmatpush1.msra.mxu1 %v215_v11  ;;  %668 = vmatpush3.msra.mxu0 %v113_v10  ;;  %v206_v24 = vld [vmem:[#allocation9 + $0x78] sm:$0xff]  ;;  %v108_v25 = vld [vmem:[#allocation8 + $0x40] sm:$0xff]  ;;  %v205_v26 = vld [vmem:[#allocation9 + $0x70] sm:$0xff] }
  0x46   :  { %231 = vmatprep.subr.mxu1 %v214_v12  ;;  %669 = vmatprep.subr.mxu0 %v112_v13  ;;  %v204_v27 = vld [vmem:[#allocation9 + $0x68] sm:$0xff]  ;;  %v107_v28 = vld [vmem:[#allocation8 + $0x38] sm:$0xff]  ;;  %v203_v29 = vld [vmem:[#allocation9 + $0x60] sm:$0xff] }
  0x47   :  { %232 = vmatpush1.msra.mxu1 %v213_v14  ;;  %670 = vmatpush3.msra.mxu0 %v112_v13  ;;  %v202_v30 = vld [vmem:[#allocation9 + $0x58] sm:$0xff]  ;;  %v106_v31 = vld [vmem:[#allocation8 + $0x30] sm:$0xff]  ;;  %v200_v33 = vld [vmem:[#allocation9 + $0x48] sm:$0xff] }
  0x48   :  { %233 = vmatprep.subr.mxu1 %v212_v15  ;;  %671 = vmatprep.subr.mxu0 %v111_v16  ;;  %v201_v32 = vld [vmem:[#allocation9 + $0x50] sm:$0xff]  ;;  %v105_v34 = vld [vmem:[#allocation8 + $0x28] sm:$0xff]  ;;  %v199_v35 = vld [vmem:[#allocation9 + $0x40] sm:$0xff] }
  0x49   :  { %234 = vmatpush1.msra.mxu1 %v211_v17  ;;  %672 = vmatpush3.msra.mxu0 %v111_v16  ;;  %v198_v36 = vld [vmem:[#allocation9 + $0x38] sm:$0xff]  ;;  %v104_v37 = vld [vmem:[#allocation8 + $0x20] sm:$0xff]  ;;  %v197_v38 = vld [vmem:[#allocation9 + $0x30] sm:$0xff] }
  0x4a   :  { %235 = vmatprep.subr.mxu1 %v210_v18  ;;  %673 = vmatprep.subr.mxu0 %v110_v19  ;;  %v196_v39 = vld [vmem:[#allocation9 + $0x28] sm:$0xff]  ;;  %v103_v40 = vld [vmem:[#allocation8 + $0x18] sm:$0xff]  ;;  %v195_v41 = vld [vmem:[#allocation9 + $0x20] sm:$0xff] }
  0x4b   :  { %236 = vmatpush1.msra.mxu1 %v209_v20  ;;  %674 = vmatpush3.msra.mxu0 %v110_v19  ;;  %v194_v42 = vld [vmem:[#allocation9 + $0x18] sm:$0xff]  ;;  %v102_v43 = vld [vmem:[#allocation8 + $0x10] sm:$0xff]  ;;  %v192_v45 = vld [vmem:[#allocation9 + $0x8] sm:$0xff] }
  0x4c   :  { %237 = vmatprep.subr.mxu1 %v208_v21  ;;  %675 = vmatprep.subr.mxu0 %v109_v22  ;;  %v193_v44 = vld [vmem:[#allocation9 + $0x10] sm:$0xff]  ;;  %v101_v46 = vld [vmem:[#allocation8 + $0x8] sm:$0xff]  ;;  %v191_v47 = vld [vmem:[#allocation9] sm:$0xff] }
  0x4d   :  { %238 = vmatpush1.msra.mxu1 %v207_v23  ;;  %676 = vmatpush3.msra.mxu0 %v109_v22  ;;  %v973_v48 = vld [vmem:[#allocation6] sm:$0xff]  ;;  %v100_v49 = vld [vmem:[#allocation8] sm:$0xff]  ;;  %v97_v51 = vld [vmem:[#allocation3 + $0x8] sm:$0xff] }
  0x4e   :  { %239 = vmatprep.subr.mxu1 %v206_v24  ;;  %677 = vmatprep.subr.mxu0 %v108_v25  ;;  %v96_v50 = vld [vmem:[#allocation3] sm:$0xff]  ;;  %v977_v52 = vld [vmem:[#allocation6 + $0x8] sm:$0xff]  ;;  %v503_v12 = vld [vmem:[#allocation11 + $0x70] sm:$0xff] }
  0x4f   :  { %240 = vmatpush1.msra.mxu1 %v205_v26  ;;  %678 = vmatpush3.msra.mxu0 %v108_v25  ;;  %v504_v11 = vld [vmem:[#allocation11 + $0x78] sm:$0xff]  ;;  %v502_v13 = vld [vmem:[#allocation11 + $0x68] sm:$0xff]  ;;  %v501_v14 = vld [vmem:[#allocation11 + $0x60] sm:$0xff] }
  0x50   :  { %241 = vmatprep.subr.mxu1 %v204_v27  ;;  %679 = vmatprep.subr.mxu0 %v107_v28  ;;  %v500_v15 = vld [vmem:[#allocation11 + $0x58] sm:$0xff]  ;;  %v499_v16 = vld [vmem:[#allocation11 + $0x50] sm:$0xff]  ;;  %v498_v17 = vld [vmem:[#allocation11 + $0x48] sm:$0xff] }
  0x51   :  { %242 = vmatpush1.msra.mxu1 %v203_v29  ;;  %680 = vmatpush3.msra.mxu0 %v107_v28  ;;  %v497_v18 = vld [vmem:[#allocation11 + $0x40] sm:$0xff]  ;;  %v496_v19 = vld [vmem:[#allocation11 + $0x38] sm:$0xff]  ;;  %v495_v20 = vld [vmem:[#allocation11 + $0x30] sm:$0xff] }
  0x52   :  { %243 = vmatprep.subr.mxu1 %v202_v30  ;;  %681 = vmatprep.subr.mxu0 %v106_v31  ;;  %v494_v21 = vld [vmem:[#allocation11 + $0x28] sm:$0xff]  ;;  %v493_v22 = vld [vmem:[#allocation11 + $0x20] sm:$0xff]  ;;  %v492_v23 = vld [vmem:[#allocation11 + $0x18] sm:$0xff] }
  0x53   :  { %244 = vmatpush1.msra.mxu1 %v201_v32  ;;  %682 = vmatpush3.msra.mxu0 %v106_v31  ;;  %v491_v30 = vld [vmem:[#allocation11 + $0x10] sm:$0xff]  ;;  %v490_v31 = vld [vmem:[#allocation11 + $0x8] sm:$0xff]  ;;  %v489_v32 = vld [vmem:[#allocation11] sm:$0xff] }
  0x54   :  { %245 = vmatprep.subr.mxu1 %v200_v33  ;;  %683 = vmatprep.subr.mxu0 %v105_v34  ;;  %v484_v33 = vstv %s1006_s6  ;;  %s904_s6 = smov [#allocation12]  }
  0x55   :  { %246 = vmatpush1.msra.mxu1 %v199_v35  ;;  %684 = vmatpush3.msra.mxu0 %v105_v34  ;;  %s602_s8 = sshll.u32 %s904_s6, 4  ;;  %s603_s8 = int_to_ptr.vmem [resolvable:$true] %s602_s8 }
  0x56   :  { %247 = vmatprep.subr.mxu1 %v198_v36  ;;  %685 = vmatprep.subr.mxu0 %v104_v37  ;;  %p871_p12 = scmp.lt.s32.totalorder %s603_s8, %s603_s8 }
  0x57   :  { %248 = vmatpush1.msra.mxu1 %v197_v38  ;;  %686 = vmatpush3.msra.mxu0 %v104_v37 }
  0x58   :  { %249 = vmatprep.subr.mxu1 %v196_v39  ;;  %687 = vmatprep.subr.mxu0 %v103_v40 }
  0x59   :  { %250 = vmatpush1.msra.mxu1 %v195_v41  ;;  %688 = vmatpush3.msra.mxu0 %v103_v40  ;;  %v618_v40 = vld [vmem:[%s1005_s5] ss:$0 sm:$0xff]  ;;  %s866_s5 = scalar_lea.vmem %s603_s8, 256 }
  0x5a   :  { %251 = vmatprep.subr.mxu1 %v194_v42  ;;  %689 = vmatprep.subr.mxu0 %v102_v43  ;;  %p867_p11 = scmp.ne.s32.totalorder %s603_s8, %s866_s5  ;;  %p872_p13 = scmp.lt.s32.totalorder %s866_s5, %s866_s5 }
  0x5b   :  { %252 = vmatpush1.msra.mxu1 %v193_v44  ;;  %690 = vmatpush3.msra.mxu0 %v102_v43 }
  0x5c   :  { %253 = vmatprep.subr.mxu1 %v192_v45  ;;  %691 = vmatprep.subr.mxu0 %v101_v46  ;;  %p873_p0 = por %p872_p13, %p871_p12 }
  0x5d   :  { %254 = vmatpush1.msra.mxu1 %v191_v47  ;;  %692 = vmatpush3.msra.mxu0 %v101_v46 }
  0x5e   :  { %288 = vmatmul.mubr.f32.vlgmr.msra.gmra.mxu1 %v973_v48  ;;  %693 = vmatprep.subr.mxu0 %v100_v49  ;;  %p874_p1 = pnand %p873_p0, %p867_p11 }
  0x5f   :  { %293 = vmatprep.mubr.f32.mxu1 %v903_v0  ;;  %694 = vmatpush3.msra.mxu0 %v100_v49 }
  0x60   :  { %695 = vmatprep.mubr.f32.mxu0 %v96_v50  ;;  %712 = vmatprep.subr.mxu0 %v504_v11 }
  0x61   :  { %696 = vmatmul.mubr.f32.vlgmr.msra.gmra.mxu0 %v97_v51 }
  0x62   :  { %294 = vmatmul.mubr.f32.gmra.mxu1 %v977_v52  ;;  %713 = vmatpush3.msra.mxu0 %v504_v11 }
  0x63   :  { %714 = vmatprep.subr.mxu0 %v503_v12 }
  0x64   :  { %715 = vmatpush3.msra.mxu0 %v503_v12 }
  0x65   :  { %716 = vmatprep.subr.mxu0 %v502_v13 }
  0x66   :  { %717 = vmatpush3.msra.mxu0 %v502_v13 }
  0x67   :  { %718 = vmatprep.subr.mxu0 %v501_v14 }
  0x68   :  { %719 = vmatpush3.msra.mxu0 %v501_v14 }
  0x69   :  { %720 = vmatprep.subr.mxu0 %v500_v15 }
  0x6a   :  { %721 = vmatpush3.msra.mxu0 %v500_v15 }
  0x6b   :  { %722 = vmatprep.subr.mxu0 %v499_v16 }
  0x6c   :  { %723 = vmatpush3.msra.mxu0 %v499_v16 }
  0x6d   :  { %724 = vmatprep.subr.mxu0 %v498_v17 }
  0x6e   :  { %725 = vmatpush3.msra.mxu0 %v498_v17 }
  0x6f   :  { %726 = vmatprep.subr.mxu0 %v497_v18 }
  0x70   :  { %727 = vmatpush3.msra.mxu0 %v497_v18 }
  0x71   :  { %728 = vmatprep.subr.mxu0 %v496_v19 }
  0x72   :  { %729 = vmatpush3.msra.mxu0 %v496_v19 }
  0x73   :  { %730 = vmatprep.subr.mxu0 %v495_v20 }
  0x74   :  { %731 = vmatpush3.msra.mxu0 %v495_v20 }
  0x75   :  { %732 = vmatprep.subr.mxu0 %v494_v21 }
  0x76   :  { %733 = vmatpush3.msra.mxu0 %v494_v21 }
  0x77   :  { %734 = vmatprep.subr.mxu0 %v493_v22 }
  0x78   :  { %735 = vmatpush3.msra.mxu0 %v493_v22 }
  0x79   :  { %736 = vmatprep.subr.mxu0 %v492_v23 }
  0x7a   :  { %737 = vmatpush3.msra.mxu0 %v492_v23 }
  0x7b   :  { %738 = vmatprep.subr.mxu0 %v491_v30 }
  0x7c   :  { %739 = vmatpush3.msra.mxu0 %v491_v30 }
  0x7d   :  { %740 = vmatprep.subr.mxu0 %v490_v31 }
  0x7e   :  { %741 = vmatpush3.msra.mxu0 %v490_v31 }
  0x7f   :  { %742 = vmatprep.subr.mxu0 %v489_v32 }
  0x80   :  { %743 = vmatpush3.msra.mxu0 %v489_v32 }
 0x11e   :  { %v289_v53 = vpop.f32.mrf.mxu1 }
 0x120   :  { %v291_v54 = vpop.f32.mrf.mxu1 }
 0x121   :  { %v697_v55 = vpop.f32.mrf.mxu0 }
 0x122   :  { %v295_v56 = vpop.f32.mrf.mxu1 }
 0x123   :  { %698 = vmatprep.subr.mxu1 %v295_v56  ;;  %v182_v57 = vpop.f32.mrf.mxu0 }
 0x124   :  { %699 = vmatpush3.xpose.msra.mxu1 %v295_v56  ;;  %702 = vmatprep.mubr.f32.mxu1 %v182_v57  ;;  %v297_v58 = vpop.f32.mrf.mxu1 }
 0x125   :  { %700 = vmatprep.subr.mxu1 %v289_v53 }
 0x128   :  { %701 = vmatpush3.xpose.msra.mxu1 %v289_v53 }
 0x129   :  { %705 = vmatprep.subr.mxu1 %v297_v58 }
 0x12b   :  { %703 = vmatmul.mubr.f32.vlgmr.msra.gmra.mxu1 %v697_v55 }
 0x12c   :  { %706 = vmatpush3.msra.mxu1 %v297_v58 }
 0x12d   :  { %707 = vmatprep.subr.mxu1 %v291_v54 }
 0x12e   :  { %708 = vmatpush3.msra.mxu1 %v291_v54 }
 0x1eb   :  { %v704_v59 = vpop.f32.mrf.mxu1 }
 0x1ec   :  { %v376_v62 = vmul.f32 0.088388346, %v704_v59 }
 0x1ed   :  { %v366_v60 = vpop.f32.mrf.mxu1 }
 0x1ee   :  { %v375_v61 = vmul.f32 0.088388346, %v366_v60  ;;  %v381_v0 = vsel %vm377_vm0, %v376_v62, -inf }
 0x1f0   :  { %v378_v63 = vsel %vm377_vm0, %v375_v61, -inf }
 0x1f1   :  { %379 = vmax.xlane.f32.xlu0 %v378_v63 }
 0x1f5   :  { %382 = vmax.xlane.f32.xlu0 %v381_v0 }
 0x27a   :  { %v380_v1 = vpop.xlane.xlu0 %379 }
 0x27b   :  { %v384_v2 = vsub.f32 %v375_v61, %v380_v1 }
 0x27d   :  { %v386_v3 = vmul.f32 1.442695, %v384_v2 }
 0x27e   :  { %v383_v4 = vpop.xlane.xlu0 %382 }
 0x27f   :  { %758 = vpow2.f32 %v386_v3  ;;  %v385_v5 = vsub.f32 %v376_v62, %v383_v4 }
 0x281   :  { %v388_v6 = vmul.f32 1.442695, %v385_v5 }
 0x283   :  { %760 = vpow2.f32 %v388_v6 }
 0x28c   :  { %v759_v7 = vpop.eup %758 }
 0x28d   :  { %v390_v8 = vsel %vm377_vm0, %v759_v7, 0.0 }
 0x28e   :  { %391 = vadd.xlane.f32.xlu1 %v390_v8 }
 0x290   :  { %v761_v9 = vpop.eup %760 }
 0x291   :  { %v393_v10 = vsel %vm377_vm0, %v761_v9, 0.0 }
 0x292   :  { %394 = vadd.xlane.f32.xlu1 %v393_v10 }
 0x317   :  { %v392_v24 = vpop.xlane.xlu1 %391 }
 0x318   :  { %762 = vrcp.f32 %v392_v24 }
 0x31b   :  { %v395_v25 = vpop.xlane.xlu1 %394 }
 0x31c   :  { %764 = vrcp.f32 %v395_v25 }
 0x325   :  { %v763_v26 = vpop.eup %762 }
 0x326   :  { %v398_v27 = vmul.f32 %v763_v26, %v759_v7 }
 0x328   :  { %709 = vmatprep.mubr.msk.f32.mxu1 %vm377_vm0, %v398_v27 }
 0x329   :  { %v765_v28 = vpop.eup %764 }
 0x32a   :  { %v399_v29 = vmul.f32 %v765_v28, %v761_v9 }
 0x32c   :  { %710 = vmatmul.mubr.msk.f32.vlgmr.msra.gmra.mxu1 %vm377_vm0, %v399_v29 }
 0x3ec   :  { %v711_v34 = vpop.f32.mrf.mxu1 }
 0x3ed   :  { %v486_v35 = vmul.f32 %v711_v34, %v484_v33  ;;  %vm483_vm1 = vcmp.gt.f32.partialorder %v711_v34, 0.0 }
 0x3ee   :  { %v472_v36 = vpop.f32.mrf.mxu1 }
 0x3ef   :  { %vm482_vm2 = vcmp.gt.f32.partialorder %v472_v36, 0.0  ;;  %v485_v37 = vmul.f32 %v484_v33, %v472_v36  ;;  %v488_v39 = vsel %vm483_vm1, %v711_v34, %v486_v35 }
 0x3f1   :  { %v487_v38 = vsel %vm482_vm2, %v472_v36, %v485_v37 }
 0x3f2   :  { %744 = vmatprep.mubr.f32.mxu0 %v487_v38 }
 0x3f3   :  { %745 = vmatmul.mubr.f32.vlgmr.msra.gmra.mxu0 %v488_v39 }
 0x4b3   :  { %v746_v41 = vpop.f32.mrf.mxu0 }
 0x4b4   :  { %v584_v42 = vadd.f32 %v746_v41, %v618_v40 }
 0x4b5   :  { %v578_v43 = vpop.f32.mrf.mxu0 }
 0x4b6   :  { %v588_v44 = vadd.f32 %v584_v42, %v977_v52  ;;  %v579_v45 = vadd.f32 %v618_v40, %v578_v43 }
 0x4b8   :  { %v592_v46 = vmul.f32 %v588_v44, %v484_v33  ;;  %v587_v47 = vadd.f32 %v579_v45, %v973_v48  ;;  %vm590_vm3 = vcmp.gt.f32.partialorder %v588_v44, 0.0 }
 0x4ba   :  { %v591_v49 = vmul.f32 %v587_v47, %v484_v33  ;;  %vm589_vm4 = vcmp.gt.f32.partialorder %v587_v47, 0.0  ;;  %v594_v50 = vsel %vm590_vm3, %v588_v44, %v592_v46 }
 0x4bb   :  { %596 = vst [vmem:[#allocation12 + $0x8] sm:$0xff] %v594_v50 }
 0x4bc   :  { %v593_v51 = vsel %vm589_vm4, %v587_v47, %v591_v49 }
 0x4bd   :  { %595 = vst [vmem:[#allocation12] sm:$0xff] %v593_v51 }
 0x4be   :  { %877 = shalt.err (!%p874_p1)
}
 0x4bf   :  { %608 = dma.vmem_to_hbm [thread:$0]  %s603_s8, 256, %s1007_s7, [#allocation5], %s896_s29, %s896_s29, %s897_s30  }
 0x4c0   :  { %892 = dma.done.wait [#allocation5], 256  }
 0x4c1   :  { %893 = vsyncadd [#allocation5], 4294967040 }
 0x4c2   :  { %612 = vsyncpa [#allocation4], 1 }
 0x4c3   :  { %613 = vsyncpa [#allocation7], 1 }
 0x4c4   :  { %614 = vsyncpa [#allocation10], 1 }
 0x4c5   :  { %615 = vsyncpa [#allocation5], 1 }

</bundles_post_ra>
